<compile_context>
chip_gen: v6e
topology: v6e:2x2x1
jax: 0.10.0
libtpu: 0.0.40
codegen_flags: <defaults>
</compile_context>

<pallas_src>
import math
import functools

import jax
import jax.numpy as jnp
from jax import lax
from jax.experimental import pallas as pl
from jax.experimental.pallas import tpu as pltpu

_NEG_INF = -1e30          # applied strictly in f32
_LN_EPS = 1e-5


def _vmem_limit_bytes():
    """Generation-aware VMEM budget: ~100 MiB on 128-MiB parts (v5e/v6e),
    ~48 MiB on v7x (64 MiB physical), always leaving compiler headroom."""
    cap = 128 * 1024 * 1024
    try:
        cap = int(pltpu.get_tpu_info().vmem_capacity_bytes)
    except Exception:
        pass
    lim = min(cap - 16 * 1024 * 1024, 100 * 1024 * 1024)
    return int(max(lim, 32 * 1024 * 1024))


def _layernorm(x, w, b, eps=_LN_EPS):
    mu = jnp.mean(x, axis=-1, keepdims=True)
    var = jnp.mean((x - mu) ** 2, axis=-1, keepdims=True)
    return (x - mu) * lax.rsqrt(var + eps) * w + b


def _new_gelu(x):
    return 0.5 * x * (1.0 + jnp.tanh(
        math.sqrt(2.0 / math.pi) * (x + 0.044715 * x * x * x)))


# ----------------------- kernel 1: ln_1 + qkv projection --------------------
def _qkv_kernel(x_ref, ln1w_ref, ln1b_ref, wqkv_ref, bqkv_ref,
                q_ref, k_ref, v_ref, *, n_head):
    x = x_ref[0]                                     # (tq, C) f32
    C = x.shape[-1]
    hs = C // n_head
    scale = 1.0 / math.sqrt(hs)

    h1 = _layernorm(x, ln1w_ref[...], ln1b_ref[...])
    # one (tq,C)x(C,3C) matmul keeps the MXU contraction dim at C
    qkv = jnp.dot(h1.astype(wqkv_ref.dtype), wqkv_ref[...],
                  preferred_element_type=jnp.float32) + bqkv_ref[...]

    # per-head stores into (B, nh, T, hs) -- no stack/concat; 1/sqrt(hs) is
    # folded into q so attention never scales scores.
    # TODO(synk): pack 2 heads per block when hs < 128 for unmasked stores.
    for h in range(n_head):
        lo = h * hs
        q_ref[0, h] = (qkv[:, lo:lo + hs] * scale).astype(q_ref.dtype)
        k_ref[0, h] = qkv[:, C + lo:C + lo + hs].astype(k_ref.dtype)
        v_ref[0, h] = qkv[:, 2 * C + lo:2 * C + lo + hs].astype(v_ref.dtype)


# ----------------------- kernel 2: flash causal attention -------------------
def _flash_attn_kernel(qi_tbl_ref, ki_tbl_ref,          # scalar prefetch (SMEM)
                       q_ref, k_ref, v_ref, o_ref,
                       m_sc, l_sc, acc_sc, *, tq, tk, n_head, hs):
    s_idx = pl.program_id(1)
    qi = qi_tbl_ref[s_idx]
    ki = ki_tbl_ref[s_idx]

    @pl.when(ki == 0)
    def _():
        m_sc[...] = jnp.full(m_sc.shape, _NEG_INF, jnp.float32)
        l_sc[...] = jnp.zeros(l_sc.shape, jnp.float32)
        acc_sc[...] = jnp.zeros(acc_sc.shape, jnp.float32)

    def tile_update(apply_mask):
        qh = q_ref[0]                      # (nh, tq, hs) bf16, pre-scaled
        kh = k_ref[0]                      # (nh, tk, hs) bf16
        vh = v_ref[0]                      # (nh, tk, hs) bf16
        # batched over heads; contract hs directly (no explicit transpose)
        s = lax.dot_general(qh, kh, (((2,), (2,)), ((0,), (0,))),
                            preferred_element_type=jnp.float32)  # (nh,tq,tk)
        if apply_mask:                     # only on diagonal-overlap tiles
            row = qi * tq + lax.broadcasted_iota(jnp.int32, (n_head, tq, tk), 1)
            col = ki * tk + lax.broadcasted_iota(jnp.int32, (n_head, tq, tk), 2)
            s = jnp.where(col <= row, s, _NEG_INF)
        m_prev = m_sc[...]
        m_new = jnp.maximum(m_prev, jnp.max(s, axis=-1, keepdims=True))
        alpha = jnp.exp(m_prev - m_new)
        p = jnp.exp(s - m_new)
        l_sc[...] = alpha * l_sc[...] + jnp.sum(p, axis=-1, keepdims=True)
        acc_sc[...] = alpha * acc_sc[...] + lax.dot_general(
            p.astype(vh.dtype), vh, (((2,), (1,)), ((0,), (0,))),
            preferred_element_type=jnp.float32)
        m_sc[...] = m_new

    on_diag = (ki + 1) * tk > qi * tq      # tile touches the causal diagonal

    @pl.when(on_diag)
    def _():
        tile_update(True)

    @pl.when(jnp.logical_not(on_diag))
    def _():
        tile_update(False)                 # strictly-below-diagonal fast path

    # last KV tile for this q tile (schedule guarantees it exists)
    @pl.when((ki + 1) * tk >= (qi + 1) * tq)
    def _():
        inv_l = pl.reciprocal(l_sc[...], approx=True)      # (nh, tq, 1)
        for h in range(n_head):                            # once per q tile
            o_ref[0, :, h * hs:(h + 1) * hs] = (
                acc_sc[h] * inv_l[h]).astype(o_ref.dtype)


# --------- kernel 3: out-proj + residual + ln_2 + streamed MLP --------------
def _proj_mlp_kernel(x_ref, y_ref, wproj_ref, bproj_ref,
                     ln2w_ref, ln2b_ref,
                     wfc_ref, bfc_ref, wmlp_ref, bmlp_ref,
                     out_ref, x1_sc, h2_sc, acc_sc):
    n = pl.program_id(2)

    @pl.when(n == 0)
    def _():
        # single C-deep (tq,C)x(C,C) out-projection (y is already (tq,C))
        att = jnp.dot(y_ref[0], wproj_ref[...],
                      preferred_element_type=jnp.float32) + bproj_ref[...]
        x1 = x_ref[0] + att
        x1_sc[...] = x1
        h2_sc[...] = _layernorm(x1, ln2w_ref[...],
                                ln2b_ref[...]).astype(h2_sc.dtype)
        acc_sc[...] = jnp.zeros(acc_sc.shape, jnp.float32)

    # one tile of the 4C hidden dim per grid step: streams wfc / wmlp
    hfc = jnp.dot(h2_sc[...], wfc_ref[...],
                  preferred_element_type=jnp.float32) + bfc_ref[...]
    g = _new_gelu(hfc)
    acc_sc[...] += jnp.dot(g.astype(wmlp_ref.dtype), wmlp_ref[...],
                           preferred_element_type=jnp.float32)

    @pl.when(n == pl.num_programs(2) - 1)
    def _():
        out_ref[0] = (x1_sc[...] + acc_sc[...]
                      + bmlp_ref[...]).astype(out_ref.dtype)


# --------------------------------- wrapper ----------------------------------
def _pick_seq_tile(dim, target):
    if dim <= target:
        return dim
    for t in range(target, 0, -1):
        if dim % t == 0 and t % 8 == 0:
            return t
    return dim


def _pick_lane_tile(dim, target):
    if dim <= target:
        return dim
    for t in range(target, 0, -1):
        if dim % t == 0 and t % 128 == 0:
            return t
    return dim


def block_forward(x, params, n_head, *, q_tile=256, kv_tile=256,
                  mlp_tile=512, matmul_dtype=jnp.bfloat16):
    """x: (B, T, C). Returns (y, (k, v)); k, v: (B, n_head, T, hs) bf16."""
    B, T, C = x.shape
    assert C % n_head == 0
    hs = C // n_head
    H = 4 * C

    (ln1w, ln1b, wqkv, bqkv, wproj, bproj,
     ln2w, ln2b, wfc, bfc, wmlp, bmlp) = params

    tq = _pick_seq_tile(T, q_tile)
    tk = _pick_seq_tile(T, kv_tile)
    tn = _pick_lane_tile(H, mlp_tile)
    nq, nk, nn = T // tq, T // tk, H // tn

    # lower-triangular (qi, ki) schedule: only causally relevant KV tiles.
    pairs = [(qi, ki) for qi in range(nq) for ki in range(nk)
             if ki * tk < (qi + 1) * tq]
    n_steps = len(pairs)
    qi_tbl = jnp.asarray([p[0] for p in pairs], dtype=jnp.int32)
    ki_tbl = jnp.asarray([p[1] for p in pairs], dtype=jnp.int32)

    vmem_limit = _vmem_limit_bytes()
    f32 = jnp.float32
    bpe = jnp.dtype(matmul_dtype).itemsize

    # weights stored (in, out); bf16 operands, f32 accumulation
    wqkv_m = wqkv.astype(matmul_dtype)                       # (C, 3C)
    wproj_m = wproj.astype(matmul_dtype)                     # (C, C)
    wfc_m = wfc.astype(matmul_dtype)                         # (C, 4C)
    wmlp_m = wmlp.astype(matmul_dtype)                       # (4C, C)

    ln1w2 = ln1w.reshape(1, C).astype(f32)
    ln1b2 = ln1b.reshape(1, C).astype(f32)
    ln2w2 = ln2w.reshape(1, C).astype(f32)
    ln2b2 = ln2b.reshape(1, C).astype(f32)
    bqkv2 = bqkv.reshape(1, 3 * C).astype(f32)
    bproj2 = bproj.reshape(1, C).astype(f32)
    bfc2 = bfc.reshape(1, H).astype(f32)
    bmlp2 = bmlp.reshape(1, C).astype(f32)

    # ---- kernel 1: ln_1 + qkv projection -----------------------------------
    q, k, v = pl.pallas_call(
        functools.partial(_qkv_kernel, n_head=n_head),
        out_shape=(
            jax.ShapeDtypeStruct((B, n_head, T, hs), matmul_dtype),  # scaled q
            jax.ShapeDtypeStruct((B, n_head, T, hs), matmul_dtype),  # k cache
            jax.ShapeDtypeStruct((B, n_head, T, hs), matmul_dtype),  # v cache
        ),
        grid_spec=pltpu.PrefetchScalarGridSpec(
            num_scalar_prefetch=0,
            grid=(B, nq),
            in_specs=[
                pl.BlockSpec((1, tq, C), lambda b, i: (b, i, 0)),
                pl.BlockSpec((1, C), lambda b, i: (0, 0)),
                pl.BlockSpec((1, C), lambda b, i: (0, 0)),
                pl.BlockSpec((C, 3 * C), lambda b, i: (0, 0)),
                pl.BlockSpec((1, 3 * C), lambda b, i: (0, 0)),
            ],
            out_specs=[
                pl.BlockSpec((1, n_head, tq, hs), lambda b, i: (b, 0, i, 0)),
                pl.BlockSpec((1, n_head, tq, hs), lambda b, i: (b, 0, i, 0)),
                pl.BlockSpec((1, n_head, tq, hs), lambda b, i: (b, 0, i, 0)),
            ],
        ),
        compiler_params=pltpu.CompilerParams(
            dimension_semantics=("parallel", "parallel"),
            vmem_limit_bytes=vmem_limit),
        cost_estimate=pl.CostEstimate(
            flops=int(2 * B * T * C * 3 * C),
            transcendentals=0,
            bytes_accessed=int(B * T * C * 4 + 3 * C * C * bpe
                               + 3 * B * T * C * bpe)),
    )(x, ln1w2, ln1b2, wqkv_m, bqkv2)

    # ---- kernel 2: flash causal attention (lower-triangular schedule) ------
    # Output layout is (B, T, C): head h occupies lanes [h*hs, (h+1)*hs), so
    # kernel 3 can do one C-deep out-projection without any head concat.
    # Note: only B is a megacore-parallel axis here (v7x with B=1 runs on one
    # TC for this kernel).
    y_att = pl.pallas_call(
        functools.partial(_flash_attn_kernel, tq=tq, tk=tk,
                          n_head=n_head, hs=hs),
        out_shape=jax.ShapeDtypeStruct((B, T, C), matmul_dtype),
        grid_spec=pltpu.PrefetchScalarGridSpec(
            num_scalar_prefetch=2,
            grid=(B, n_steps),
            in_specs=[
                pl.BlockSpec((1, n_head, tq, hs),
                             lambda b, s, qi_t, ki_t: (b, 0, qi_t[s], 0)),
                pl.BlockSpec((1, n_head, tk, hs),
                             lambda b, s, qi_t, ki_t: (b, 0, ki_t[s], 0)),
                pl.BlockSpec((1, n_head, tk, hs),
                             lambda b, s, qi_t, ki_t: (b, 0, ki_t[s], 0)),
            ],
            out_specs=pl.BlockSpec((1, tq, C),
                                   lambda b, s, qi_t, ki_t: (b, qi_t[s], 0)),
            scratch_shapes=[
                pltpu.VMEM((n_head, tq, 1), jnp.float32),    # running max  m
                pltpu.VMEM((n_head, tq, 1), jnp.float32),    # running denom l
                pltpu.VMEM((n_head, tq, hs), jnp.float32),   # output accum
            ],
        ),
        compiler_params=pltpu.CompilerParams(
            dimension_semantics=("parallel", "arbitrary"),
            vmem_limit_bytes=vmem_limit),
        cost_estimate=pl.CostEstimate(
            flops=int(4 * B * n_steps * n_head * tq * tk * hs),
            transcendentals=int(B * n_steps * n_head * tq * tk),
            bytes_accessed=int(B * n_steps * 2 * n_head * tk * hs * bpe
                               + 2 * B * T * C * bpe)),
    )(qi_tbl, ki_tbl, q, k, v)

    # ---- kernel 3: out-proj + residual + ln_2 + streamed MLP + residual ----
    out = pl.pallas_call(
        _proj_mlp_kernel,
        out_shape=jax.ShapeDtypeStruct((B, T, C), x.dtype),
        grid_spec=pltpu.PrefetchScalarGridSpec(
            num_scalar_prefetch=0,
            grid=(B, nq, nn),
            in_specs=[
                pl.BlockSpec((1, tq, C), lambda b, i, n: (b, i, 0)),      # x
                pl.BlockSpec((1, tq, C), lambda b, i, n: (b, i, 0)),      # y_att
                pl.BlockSpec((C, C), lambda b, i, n: (0, 0)),             # wproj
                pl.BlockSpec((1, C), lambda b, i, n: (0, 0)),             # bproj
                pl.BlockSpec((1, C), lambda b, i, n: (0, 0)),             # ln2w
                pl.BlockSpec((1, C), lambda b, i, n: (0, 0)),             # ln2b
                pl.BlockSpec((C, tn), lambda b, i, n: (0, n)),            # wfc
                pl.BlockSpec((1, tn), lambda b, i, n: (0, n)),            # bfc
                pl.BlockSpec((tn, C), lambda b, i, n: (n, 0)),            # wmlp
                pl.BlockSpec((1, C), lambda b, i, n: (0, 0)),             # bmlp
            ],
            out_specs=pl.BlockSpec((1, tq, C), lambda b, i, n: (b, i, 0)),
            scratch_shapes=[
                pltpu.VMEM((tq, C), jnp.float32),   # x1 = x + attn_out
                pltpu.VMEM((tq, C), matmul_dtype),  # ln_2(x1) matmul operand
                pltpu.VMEM((tq, C), jnp.float32),   # MLP accumulator
            ],
        ),
        compiler_params=pltpu.CompilerParams(
            dimension_semantics=("parallel", "parallel", "arbitrary"),
            vmem_limit_bytes=vmem_limit),
        cost_estimate=pl.CostEstimate(
            flops=int(2 * B * T * C * C + 4 * B * T * C * H),
            transcendentals=int(B * T * H),
            bytes_accessed=int(2 * B * T * C * 4 + B * T * C * bpe
                               + (C * C + 2 * C * H) * bpe)),
    )(x, y_att, wproj_m, bproj2, ln2w2, ln2b2, wfc_m, bfc2, wmlp_m, bmlp2)

    return out, (k, v)


# --------------------------- pure-JAX reference -----------------------------
def block_reference(x, params, n_head):
    B, T, C = x.shape
    hs = C // n_head
    (ln1w, ln1b, wqkv, bqkv, wproj, bproj,
     ln2w, ln2b, wfc, bfc, wmlp, bmlp) = params

    h1 = _layernorm(x, ln1w, ln1b)
    qkv = h1 @ wqkv + bqkv
    q, k, v = jnp.split(qkv, 3, axis=-1)
    q = q.reshape(B, T, n_head, hs).transpose(0, 2, 1, 3)
    k = k.reshape(B, T, n_head, hs).transpose(0, 2, 1, 3)
    v = v.reshape(B, T, n_head, hs).transpose(0, 2, 1, 3)
    s = jnp.einsum('bhtd,bhsd->bhts', q, k) / math.sqrt(hs)
    row = lax.broadcasted_iota(jnp.int32, (T, T), 0)
    col = lax.broadcasted_iota(jnp.int32, (T, T), 1)
    s = jnp.where(col <= row, s, -jnp.inf)
    p = jax.nn.softmax(s, axis=-1)
    y = jnp.einsum('bhts,bhsd->bhtd', p, v)
    y = y.transpose(0, 2, 1, 3).reshape(B, T, C)
    y = y @ wproj + bproj
    x1 = x + y
    h2 = _layernorm(x1, ln2w, ln2b)
    mlp = _new_gelu(h2 @ wfc + bfc) @ wmlp + bmlp
    return x1 + mlp, (k, v)


if __name__ == "__main__":
    # Small config exercising every tiling path: n_embd=64, n_head=4 (hs=16),
    # seq=16, batch=2; q/kv tiles of 8 -> 3-step lower-triangular flash
    # schedule; MLP hidden tile 128 streams the 4C=256 hidden dim in 2 steps.
    B, T, C, NH = 2, 16, 64, 4

    key = jax.random.PRNGKey(0)
    keys = jax.random.split(key, 8)
    x = jax.random.normal(keys[0], (B, T, C), dtype=jnp.float32)

    def lin_w(k, fan_in, fan_out):
        # stored as (in, out): kernels compute x @ W
        return 0.02 * jax.random.normal(k, (fan_in, fan_out), dtype=jnp.float32)

    params = (
        jnp.ones((C,), jnp.float32),                          # ln_1.weight
        jnp.zeros((C,), jnp.float32),                         # ln_1.bias
        lin_w(keys[1], C, 3 * C),                             # attn.c_attn.W^T
        0.02 * jax.random.normal(keys[2], (3 * C,), dtype=jnp.float32),
        lin_w(keys[3], C, C),                                 # attn.c_proj.W^T
        jnp.zeros((C,), jnp.float32),                         # attn.c_proj.bias
        jnp.ones((C,), jnp.float32),                          # ln_2.weight
        jnp.zeros((C,), jnp.float32),                         # ln_2.bias
        lin_w(keys[4], C, 4 * C),                             # mlp.c_fc.W^T
        0.02 * jax.random.normal(keys[5], (4 * C,), dtype=jnp.float32),
        lin_w(keys[6], 4 * C, C),                             # mlp.c_proj.W^T
        jnp.zeros((C,), jnp.float32),                         # mlp.c_proj.bias
    )

    y, (k_cache, v_cache) = block_forward(
        x, params, NH, q_tile=8, kv_tile=8, mlp_tile=128)
    jax.block_until_ready((y, k_cache, v_cache))

    y_exp, (k_exp, v_exp) = block_reference(x, params, NH)

    assert k_cache.shape == (B, NH, T, C // NH)
    # bf16 matmul operands / bf16 kv cache (f32 accumulation) -> loose tols
    assert jnp.allclose(y, y_exp, atol=2e-2, rtol=2e-2), \
        float(jnp.max(jnp.abs(y - y_exp)))
    assert jnp.allclose(k_cache.astype(jnp.float32), k_exp, atol=1e-2, rtol=1e-2)
    assert jnp.allclose(v_cache.astype(jnp.float32), v_exp, atol=1e-2, rtol=1e-2)

    print("KERNEL_OK")
</pallas_src>

<mosaic_0001>
module attributes {stable_mosaic.version = 11 : i64} {
  func.func @_qkv_kernel(%arg0: i32, %arg1: i32, %arg2: memref<1x8x64xf32, #tpu.memory_space<vmem>>, %arg3: memref<1x64xf32, #tpu.memory_space<vmem>>, %arg4: memref<1x64xf32, #tpu.memory_space<vmem>>, %arg5: memref<64x192xbf16, #tpu.memory_space<vmem>>, %arg6: memref<1x192xf32, #tpu.memory_space<vmem>>, %arg7: memref<1x4x8x16xbf16, #tpu.memory_space<vmem>>, %arg8: memref<1x4x8x16xbf16, #tpu.memory_space<vmem>>, %arg9: memref<1x4x8x16xbf16, #tpu.memory_space<vmem>>) attributes {dimension_semantics = [#tpu.dimension_semantics<parallel>, #tpu.dimension_semantics<parallel>], iteration_bounds = array<i64: 2, 2>, scalar_prefetch = 0 : i64, scratch_operands = 0 : i64, tpu.core_type = #tpu.core_type<tc>, window_params = [{transform_indices = @transform_0, window_bounds = array<i64: 1, 8, 64>}, {pipeline_mode = #tpu.pipeline_mode<synchronous>, transform_indices = @transform_1, window_bounds = array<i64: 1, 64>}, {pipeline_mode = #tpu.pipeline_mode<synchronous>, transform_indices = @transform_2, window_bounds = array<i64: 1, 64>}, {pipeline_mode = #tpu.pipeline_mode<synchronous>, transform_indices = @transform_3, window_bounds = array<i64: 64, 192>}, {pipeline_mode = #tpu.pipeline_mode<synchronous>, transform_indices = @transform_4, window_bounds = array<i64: 1, 192>}, {transform_indices = @transform_5, window_bounds = array<i64: 1, 4, 8, 16>}, {transform_indices = @transform_6, window_bounds = array<i64: 1, 4, 8, 16>}, {transform_indices = @transform_7, window_bounds = array<i64: 1, 4, 8, 16>}]} {
    %c0 = arith.constant 0 : index
    %c0_0 = arith.constant 0 : index
    %c0_1 = arith.constant 0 : index
    %0 = vector.load %arg2[%c0, %c0_0, %c0_1] : memref<1x8x64xf32, #tpu.memory_space<vmem>>, vector<1x8x64xf32>
    %1 = vector.shape_cast %0 : vector<1x8x64xf32> to vector<8x64xf32>
    %c0_2 = arith.constant 0 : index
    %c0_3 = arith.constant 0 : index
    %2 = vector.load %arg3[%c0_2, %c0_3] : memref<1x64xf32, #tpu.memory_space<vmem>>, vector<1x64xf32>
    %c0_4 = arith.constant 0 : index
    %c0_5 = arith.constant 0 : index
    %3 = vector.load %arg4[%c0_4, %c0_5] : memref<1x64xf32, #tpu.memory_space<vmem>>, vector<1x64xf32>
    %cst = arith.constant dense<0.000000e+00> : vector<8xf32>
    %4 = vector.multi_reduction <add>, %1, %cst [1] : vector<8x64xf32> to vector<8xf32>
    %5 = vector.shape_cast %4 : vector<8xf32> to vector<8x1xf32>
    %cst_6 = arith.constant 6.400000e+01 : f32
    %6 = vector.broadcast %cst_6 : f32 to vector<8x1xf32>
    %7 = arith.divf %5, %6 : vector<8x1xf32>
    %8 = vector.broadcast %7 : vector<8x1xf32> to vector<8x64xf32>
    %9 = arith.subf %1, %8 : vector<8x64xf32>
    %10 = arith.mulf %9, %9 : vector<8x64xf32>
    %cst_7 = arith.constant dense<0.000000e+00> : vector<8xf32>
    %11 = vector.multi_reduction <add>, %10, %cst_7 [1] : vector<8x64xf32> to vector<8xf32>
    %12 = vector.shape_cast %11 : vector<8xf32> to vector<8x1xf32>
    %cst_8 = arith.constant 6.400000e+01 : f32
    %13 = vector.broadcast %cst_8 : f32 to vector<8x1xf32>
    %14 = arith.divf %12, %13 : vector<8x1xf32>
    %15 = vector.broadcast %7 : vector<8x1xf32> to vector<8x64xf32>
    %16 = arith.subf %1, %15 : vector<8x64xf32>
    %cst_9 = arith.constant 9.99999974E-6 : f32
    %17 = vector.broadcast %cst_9 : f32 to vector<8x1xf32>
    %18 = arith.addf %14, %17 : vector<8x1xf32>
    %19 = math.rsqrt %18 : vector<8x1xf32>
    %20 = vector.broadcast %19 : vector<8x1xf32> to vector<8x64xf32>
    %21 = arith.mulf %16, %20 : vector<8x64xf32>
    %22 = vector.broadcast %2 : vector<1x64xf32> to vector<8x64xf32>
    %23 = arith.mulf %21, %22 : vector<8x64xf32>
    %24 = vector.broadcast %3 : vector<1x64xf32> to vector<8x64xf32>
    %25 = arith.addf %23, %24 : vector<8x64xf32>
    %26 = arith.truncf %25 : vector<8x64xf32> to vector<8x64xbf16>
    %c0_10 = arith.constant 0 : index
    %c0_11 = arith.constant 0 : index
    %27 = vector.load %arg5[%c0_10, %c0_11] : memref<64x192xbf16, #tpu.memory_space<vmem>>, vector<64x192xbf16>
    %cst_12 = arith.constant dense<0.000000e+00> : vector<8x192xf32>
    %28 = tpu.matmul %26, %27, %cst_12 {dimension_numbers = #tpu.dot_dimension_numbers<[1], [0], [0], [1], [0, 0, 1, 1], [], []>} : vector<8x64xbf16>, vector<64x192xbf16>, vector<8x192xf32> -> vector<8x192xf32>
    %c0_13 = arith.constant 0 : index
    %c0_14 = arith.constant 0 : index
    %29 = vector.load %arg6[%c0_13, %c0_14] : memref<1x192xf32, #tpu.memory_space<vmem>>, vector<1x192xf32>
    %30 = vector.broadcast %29 : vector<1x192xf32> to vector<8x192xf32>
    %31 = arith.addf %28, %30 : vector<8x192xf32>
    %32 = vector.extract_strided_slice %31 {offsets = [0, 0], sizes = [8, 16], strides = [1, 1]} : vector<8x192xf32> to vector<8x16xf32>
    %cst_15 = arith.constant 2.500000e-01 : f32
    %33 = vector.broadcast %cst_15 : f32 to vector<8x16xf32>
    %34 = arith.mulf %32, %33 : vector<8x16xf32>
    %35 = arith.truncf %34 : vector<8x16xf32> to vector<8x16xbf16>
    %c0_16 = arith.constant 0 : index
    %c0_17 = arith.constant 0 : index
    %c0_18 = arith.constant 0 : index
    %c0_19 = arith.constant 0 : index
    %36 = vector.load %arg7[%c0_16, %c0_17, %c0_18, %c0_19] : memref<1x4x8x16xbf16, #tpu.memory_space<vmem>>, vector<1x1x8x16xbf16>
    %37 = vector.shape_cast %36 : vector<1x1x8x16xbf16> to vector<8x16xbf16>
    %38 = vector.shape_cast %35 : vector<8x16xbf16> to vector<1x1x8x16xbf16>
    tpu.vector_store %arg7[%c0_16, %c0_17, %c0_18, %c0_19], %38 {strides = array<i32>} : memref<1x4x8x16xbf16, #tpu.memory_space<vmem>>, vector<1x1x8x16xbf16>,
    %39 = vector.extract_strided_slice %31 {offsets = [0, 64], sizes = [8, 16], strides = [1, 1]} : vector<8x192xf32> to vector<8x16xf32>
    %40 = arith.truncf %39 : vector<8x16xf32> to vector<8x16xbf16>
    %c0_20 = arith.constant 0 : index
    %c0_21 = arith.constant 0 : index
    %c0_22 = arith.constant 0 : index
    %c0_23 = arith.constant 0 : index
    %41 = vector.load %arg8[%c0_20, %c0_21, %c0_22, %c0_23] : memref<1x4x8x16xbf16, #tpu.memory_space<vmem>>, vector<1x1x8x16xbf16>
    %42 = vector.shape_cast %41 : vector<1x1x8x16xbf16> to vector<8x16xbf16>
    %43 = vector.shape_cast %40 : vector<8x16xbf16> to vector<1x1x8x16xbf16>
    tpu.vector_store %arg8[%c0_20, %c0_21, %c0_22, %c0_23], %43 {strides = array<i32>} : memref<1x4x8x16xbf16, #tpu.memory_space<vmem>>, vector<1x1x8x16xbf16>,
    %44 = vector.extract_strided_slice %31 {offsets = [0, 128], sizes = [8, 16], strides = [1, 1]} : vector<8x192xf32> to vector<8x16xf32>
    %45 = arith.truncf %44 : vector<8x16xf32> to vector<8x16xbf16>
    %c0_24 = arith.constant 0 : index
    %c0_25 = arith.constant 0 : index
    %c0_26 = arith.constant 0 : index
    %c0_27 = arith.constant 0 : index
    %46 = vector.load %arg9[%c0_24, %c0_25, %c0_26, %c0_27] : memref<1x4x8x16xbf16, #tpu.memory_space<vmem>>, vector<1x1x8x16xbf16>
    %47 = vector.shape_cast %46 : vector<1x1x8x16xbf16> to vector<8x16xbf16>
    %48 = vector.shape_cast %45 : vector<8x16xbf16> to vector<1x1x8x16xbf16>
    tpu.vector_store %arg9[%c0_24, %c0_25, %c0_26, %c0_27], %48 {strides = array<i32>} : memref<1x4x8x16xbf16, #tpu.memory_space<vmem>>, vector<1x1x8x16xbf16>,
    %49 = vector.extract_strided_slice %31 {offsets = [0, 16], sizes = [8, 16], strides = [1, 1]} : vector<8x192xf32> to vector<8x16xf32>
    %cst_28 = arith.constant 2.500000e-01 : f32
    %50 = vector.broadcast %cst_28 : f32 to vector<8x16xf32>
    %51 = arith.mulf %49, %50 : vector<8x16xf32>
    %52 = arith.truncf %51 : vector<8x16xf32> to vector<8x16xbf16>
    %c0_29 = arith.constant 0 : index
    %c1 = arith.constant 1 : index
    %c0_30 = arith.constant 0 : index
    %c0_31 = arith.constant 0 : index
    %53 = vector.load %arg7[%c0_29, %c1, %c0_30, %c0_31] : memref<1x4x8x16xbf16, #tpu.memory_space<vmem>>, vector<1x1x8x16xbf16>
    %54 = vector.shape_cast %53 : vector<1x1x8x16xbf16> to vector<8x16xbf16>
    %55 = vector.shape_cast %52 : vector<8x16xbf16> to vector<1x1x8x16xbf16>
    tpu.vector_store %arg7[%c0_29, %c1, %c0_30, %c0_31], %55 {strides = array<i32>} : memref<1x4x8x16xbf16, #tpu.memory_space<vmem>>, vector<1x1x8x16xbf16>,
    %56 = vector.extract_strided_slice %31 {offsets = [0, 80], sizes = [8, 16], strides = [1, 1]} : vector<8x192xf32> to vector<8x16xf32>
    %57 = arith.truncf %56 : vector<8x16xf32> to vector<8x16xbf16>
    %c0_32 = arith.constant 0 : index
    %c1_33 = arith.constant 1 : index
    %c0_34 = arith.constant 0 : index
    %c0_35 = arith.constant 0 : index
    %58 = vector.load %arg8[%c0_32, %c1_33, %c0_34, %c0_35] : memref<1x4x8x16xbf16, #tpu.memory_space<vmem>>, vector<1x1x8x16xbf16>
    %59 = vector.shape_cast %58 : vector<1x1x8x16xbf16> to vector<8x16xbf16>
    %60 = vector.shape_cast %57 : vector<8x16xbf16> to vector<1x1x8x16xbf16>
    tpu.vector_store %arg8[%c0_32, %c1_33, %c0_34, %c0_35], %60 {strides = array<i32>} : memref<1x4x8x16xbf16, #tpu.memory_space<vmem>>, vector<1x1x8x16xbf16>,
    %61 = vector.extract_strided_slice %31 {offsets = [0, 144], sizes = [8, 16], strides = [1, 1]} : vector<8x192xf32> to vector<8x16xf32>
    %62 = arith.truncf %61 : vector<8x16xf32> to vector<8x16xbf16>
    %c0_36 = arith.constant 0 : index
    %c1_37 = arith.constant 1 : index
    %c0_38 = arith.constant 0 : index
    %c0_39 = arith.constant 0 : index
    %63 = vector.load %arg9[%c0_36, %c1_37, %c0_38, %c0_39] : memref<1x4x8x16xbf16, #tpu.memory_space<vmem>>, vector<1x1x8x16xbf16>
    %64 = vector.shape_cast %63 : vector<1x1x8x16xbf16> to vector<8x16xbf16>
    %65 = vector.shape_cast %62 : vector<8x16xbf16> to vector<1x1x8x16xbf16>
    tpu.vector_store %arg9[%c0_36, %c1_37, %c0_38, %c0_39], %65 {strides = array<i32>} : memref<1x4x8x16xbf16, #tpu.memory_space<vmem>>, vector<1x1x8x16xbf16>,
    %66 = vector.extract_strided_slice %31 {offsets = [0, 32], sizes = [8, 16], strides = [1, 1]} : vector<8x192xf32> to vector<8x16xf32>
    %cst_40 = arith.constant 2.500000e-01 : f32
    %67 = vector.broadcast %cst_40 : f32 to vector<8x16xf32>
    %68 = arith.mulf %66, %67 : vector<8x16xf32>
    %69 = arith.truncf %68 : vector<8x16xf32> to vector<8x16xbf16>
    %c0_41 = arith.constant 0 : index
    %c2 = arith.constant 2 : index
    %c0_42 = arith.constant 0 : index
    %c0_43 = arith.constant 0 : index
    %70 = vector.load %arg7[%c0_41, %c2, %c0_42, %c0_43] : memref<1x4x8x16xbf16, #tpu.memory_space<vmem>>, vector<1x1x8x16xbf16>
    %71 = vector.shape_cast %70 : vector<1x1x8x16xbf16> to vector<8x16xbf16>
    %72 = vector.shape_cast %69 : vector<8x16xbf16> to vector<1x1x8x16xbf16>
    tpu.vector_store %arg7[%c0_41, %c2, %c0_42, %c0_43], %72 {strides = array<i32>} : memref<1x4x8x16xbf16, #tpu.memory_space<vmem>>, vector<1x1x8x16xbf16>,
    %73 = vector.extract_strided_slice %31 {offsets = [0, 96], sizes = [8, 16], strides = [1, 1]} : vector<8x192xf32> to vector<8x16xf32>
    %74 = arith.truncf %73 : vector<8x16xf32> to vector<8x16xbf16>
    %c0_44 = arith.constant 0 : index
    %c2_45 = arith.constant 2 : index
    %c0_46 = arith.constant 0 : index
    %c0_47 = arith.constant 0 : index
    %75 = vector.load %arg8[%c0_44, %c2_45, %c0_46, %c0_47] : memref<1x4x8x16xbf16, #tpu.memory_space<vmem>>, vector<1x1x8x16xbf16>
    %76 = vector.shape_cast %75 : vector<1x1x8x16xbf16> to vector<8x16xbf16>
    %77 = vector.shape_cast %74 : vector<8x16xbf16> to vector<1x1x8x16xbf16>
    tpu.vector_store %arg8[%c0_44, %c2_45, %c0_46, %c0_47], %77 {strides = array<i32>} : memref<1x4x8x16xbf16, #tpu.memory_space<vmem>>, vector<1x1x8x16xbf16>,
    %78 = vector.extract_strided_slice %31 {offsets = [0, 160], sizes = [8, 16], strides = [1, 1]} : vector<8x192xf32> to vector<8x16xf32>
    %79 = arith.truncf %78 : vector<8x16xf32> to vector<8x16xbf16>
    %c0_48 = arith.constant 0 : index
    %c2_49 = arith.constant 2 : index
    %c0_50 = arith.constant 0 : index
    %c0_51 = arith.constant 0 : index
    %80 = vector.load %arg9[%c0_48, %c2_49, %c0_50, %c0_51] : memref<1x4x8x16xbf16, #tpu.memory_space<vmem>>, vector<1x1x8x16xbf16>
    %81 = vector.shape_cast %80 : vector<1x1x8x16xbf16> to vector<8x16xbf16>
    %82 = vector.shape_cast %79 : vector<8x16xbf16> to vector<1x1x8x16xbf16>
    tpu.vector_store %arg9[%c0_48, %c2_49, %c0_50, %c0_51], %82 {strides = array<i32>} : memref<1x4x8x16xbf16, #tpu.memory_space<vmem>>, vector<1x1x8x16xbf16>,
    %83 = vector.extract_strided_slice %31 {offsets = [0, 48], sizes = [8, 16], strides = [1, 1]} : vector<8x192xf32> to vector<8x16xf32>
    %cst_52 = arith.constant 2.500000e-01 : f32
    %84 = vector.broadcast %cst_52 : f32 to vector<8x16xf32>
    %85 = arith.mulf %83, %84 : vector<8x16xf32>
    %86 = arith.truncf %85 : vector<8x16xf32> to vector<8x16xbf16>
    %c0_53 = arith.constant 0 : index
    %c3 = arith.constant 3 : index
    %c0_54 = arith.constant 0 : index
    %c0_55 = arith.constant 0 : index
    %87 = vector.load %arg7[%c0_53, %c3, %c0_54, %c0_55] : memref<1x4x8x16xbf16, #tpu.memory_space<vmem>>, vector<1x1x8x16xbf16>
    %88 = vector.shape_cast %87 : vector<1x1x8x16xbf16> to vector<8x16xbf16>
    %89 = vector.shape_cast %86 : vector<8x16xbf16> to vector<1x1x8x16xbf16>
    tpu.vector_store %arg7[%c0_53, %c3, %c0_54, %c0_55], %89 {strides = array<i32>} : memref<1x4x8x16xbf16, #tpu.memory_space<vmem>>, vector<1x1x8x16xbf16>,
    %90 = vector.extract_strided_slice %31 {offsets = [0, 112], sizes = [8, 16], strides = [1, 1]} : vector<8x192xf32> to vector<8x16xf32>
    %91 = arith.truncf %90 : vector<8x16xf32> to vector<8x16xbf16>
    %c0_56 = arith.constant 0 : index
    %c3_57 = arith.constant 3 : index
    %c0_58 = arith.constant 0 : index
    %c0_59 = arith.constant 0 : index
    %92 = vector.load %arg8[%c0_56, %c3_57, %c0_58, %c0_59] : memref<1x4x8x16xbf16, #tpu.memory_space<vmem>>, vector<1x1x8x16xbf16>
    %93 = vector.shape_cast %92 : vector<1x1x8x16xbf16> to vector<8x16xbf16>
    %94 = vector.shape_cast %91 : vector<8x16xbf16> to vector<1x1x8x16xbf16>
    tpu.vector_store %arg8[%c0_56, %c3_57, %c0_58, %c0_59], %94 {strides = array<i32>} : memref<1x4x8x16xbf16, #tpu.memory_space<vmem>>, vector<1x1x8x16xbf16>,
    %95 = vector.extract_strided_slice %31 {offsets = [0, 176], sizes = [8, 16], strides = [1, 1]} : vector<8x192xf32> to vector<8x16xf32>
    %96 = arith.truncf %95 : vector<8x16xf32> to vector<8x16xbf16>
    %c0_60 = arith.constant 0 : index
    %c3_61 = arith.constant 3 : index
    %c0_62 = arith.constant 0 : index
    %c0_63 = arith.constant 0 : index
    %97 = vector.load %arg9[%c0_60, %c3_61, %c0_62, %c0_63] : memref<1x4x8x16xbf16, #tpu.memory_space<vmem>>, vector<1x1x8x16xbf16>
    %98 = vector.shape_cast %97 : vector<1x1x8x16xbf16> to vector<8x16xbf16>
    %99 = vector.shape_cast %96 : vector<8x16xbf16> to vector<1x1x8x16xbf16>
    tpu.vector_store %arg9[%c0_60, %c3_61, %c0_62, %c0_63], %99 {strides = array<i32>} : memref<1x4x8x16xbf16, #tpu.memory_space<vmem>>, vector<1x1x8x16xbf16>,
    return
  }
  func.func @transform_0(%arg0: i32, %arg1: i32) -> (i32, i32, i32) {
    %c0_i32 = arith.constant 0 : i32
    %c0_i32_0 = arith.constant 0 : i32
    return %arg0, %arg1, %c0_i32 : i32, i32, i32
  }
  func.func @transform_1(%arg0: i32, %arg1: i32) -> (i32, i32) {
    %c0_i32 = arith.constant 0 : i32
    %c0_i32_0 = arith.constant 0 : i32
    %c0_i32_1 = arith.constant 0 : i32
    return %c0_i32, %c0_i32_0 : i32, i32
  }
  func.func @transform_2(%arg0: i32, %arg1: i32) -> (i32, i32) {
    %c0_i32 = arith.constant 0 : i32
    %c0_i32_0 = arith.constant 0 : i32
    %c0_i32_1 = arith.constant 0 : i32
    return %c0_i32, %c0_i32_0 : i32, i32
  }
  func.func @transform_3(%arg0: i32, %arg1: i32) -> (i32, i32) {
    %c0_i32 = arith.constant 0 : i32
    %c0_i32_0 = arith.constant 0 : i32
    %c0_i32_1 = arith.constant 0 : i32
    return %c0_i32, %c0_i32_0 : i32, i32
  }
  func.func @transform_4(%arg0: i32, %arg1: i32) -> (i32, i32) {
    %c0_i32 = arith.constant 0 : i32
    %c0_i32_0 = arith.constant 0 : i32
    %c0_i32_1 = arith.constant 0 : i32
    return %c0_i32, %c0_i32_0 : i32, i32
  }
  func.func @transform_5(%arg0: i32, %arg1: i32) -> (i32, i32, i32, i32) {
    %c0_i32 = arith.constant 0 : i32
    %c0_i32_0 = arith.constant 0 : i32
    %c0_i32_1 = arith.constant 0 : i32
    return %arg0, %c0_i32, %arg1, %c0_i32_0 : i32, i32, i32, i32
  }
  func.func @transform_6(%arg0: i32, %arg1: i32) -> (i32, i32, i32, i32) {
    %c0_i32 = arith.constant 0 : i32
    %c0_i32_0 = arith.constant 0 : i32
    %c0_i32_1 = arith.constant 0 : i32
    return %arg0, %c0_i32, %arg1, %c0_i32_0 : i32, i32, i32, i32
  }
  func.func @transform_7(%arg0: i32, %arg1: i32) -> (i32, i32, i32, i32) {
    %c0_i32 = arith.constant 0 : i32
    %c0_i32_0 = arith.constant 0 : i32
    %c0_i32_1 = arith.constant 0 : i32
    return %arg0, %c0_i32, %arg1, %c0_i32_0 : i32, i32, i32, i32
  }
}

</mosaic_0001>

<bundles_post_ra>
// kernel: tpu_custom_call.1
= control target key start
LH: loop header
LB: loop body
LE: loop exit
PB: predicated region body
PF: predicated region fallthrough
CT: control target
= control target key end

     0   :  { %s1606_s0 = inlined_call_operand.hbm [shape: f32[2,16,64], index: 0, kind: input, shape index: {}]   ;;  %s1607_s1 = inlined_call_operand.vmem [shape: f32[1,64], index: 1, kind: input, shape index: {}]   ;;  %s1608_s2 = inlined_call_operand.hbm [shape: f32[1,64], index: 2, kind: input, shape index: {}]   ;;  %s1609_s3 = inlined_call_operand.hbm [shape: bf16[64,192], index: 3, kind: input, shape index: {}]   ;;  %s1610_s4 = inlined_call_operand.vmem [shape: f32[1,192], index: 4, kind: input, shape index: {}]   ;;  %s1611_s5 = inlined_call_operand.hbm [shape: bf16[2,4,16,16], index: 5, kind: output, shape index: {0}]   ;;  %s1612_s6 = inlined_call_operand.hbm [shape: bf16[2,4,16,16], index: 6, kind: output, shape index: {1}]   ;;  %s1613_s7 = inlined_call_operand.hbm [shape: bf16[2,4,16,16], index: 7, kind: output, shape index: {2}]  }
   0x1   :  { %1628 = sst [smem:[#allocation20_spill]] %s1606_s0 }
   0x2   :  { %1629 = sst [smem:[#allocation21_spill]] %s1608_s2 }
   0x3   :  { %1630 = sst [smem:[#allocation22_spill]] %s1609_s3 }
   0x4   :  { %1631 = sst [smem:[#allocation23_spill]] %s1611_s5 }
   0x5   :  { %1632 = sst [smem:[#allocation24_spill]] %s1612_s6 }
   0x6   :  { %1633 = sst [smem:[#allocation25_spill]] %s1613_s7 }
   0x7   :  { %13 = vsyncpa [#allocation3], 0 }
   0x8   :  { %15 = vsyncpa [#allocation3 + $0x1], 0 }
   0x9   :  { %16 = vsyncpa [#allocation6], 0 }
   0xa   :  { %17 = vsyncpa [#allocation4], 0 }
   0xb   :  { %19 = vsyncpa [#allocation4 + $0x1], 0 }
   0xc   :  { %20 = vsyncpa [#allocation10], 0 }
   0xd   :  { %22 = vsyncpa [#allocation10 + $0x1], 0  ;;  %s1279_s24 = smov 0   ;;  %s1281_s25 = smov 0  }
   0xe   :  { %s1283_s26 = smov 0   ;;  %s1285_s27 = smov 0  }
   0xf   :  { %s1287_s28 = smov 0   ;;  %s1289_s29 = smov 0  }
  0x10   :  { %s1291_s30 = smov 0   ;;  %s1293_s8 = smov 0  }
  0x11 LB: > { %1634 = sst [smem:[#allocation16_spill]] %s1191_s24  ;;  %s1320_s9 = sadd.s32 4294967295, %s1219_s8   ;;  %s1219_s8 = sphi %s1293_s8, %s28_s8   ;;  %s1215_s30 = sphi %s1291_s30, %s1669_s30   ;;  %s1211_s29 = sphi %s1289_s29, %s1668_s29   ;;  %s1207_s28 = sphi %s1287_s28, %s1667_s28   ;;  %s1203_s27 = sphi %s1285_s27, %s1666_s27   ;;  %s1199_s26 = sphi %s1283_s26, %s1665_s26   ;;  %s1195_s25 = sphi %s1281_s25, %s1664_s25   ;;  %s1191_s24 = sphi %s1279_s24, %s1663_s24  }
  0x12   : > { %s1617_s10 = sadd.s32 4294967294, %s1219_s8   ;;  %p62_p0 = scmp.ne.s32.totalorder %s1195_s25, %s1191_s24 }
  0x13   : > { %p1614_p1 = scmp.eq.s32.totalorder %s1320_s9, 0  ;;  %p178_p2 = scmp.eq.s32.totalorder %s1617_s10, 3 }
  0x14   : > { %p797_p4 = scmp.ge.s32.totalorder %s1219_s8, 1  ;;  %p241_p6 = scmp.lt.s32.totalorder %s1219_s8, 5 }
  0x15   : > { %p1330_p3 = por %p1614_p1, %p62_p0  ;;  %p1335_p5 = por %p178_p2, %p62_p0 }
  0x16   : > { %p1340_p7 = pnand %p797_p4, %p241_p6  ;;  %s1221_s14 = smov [#allocation5]  }
  0x17   : > { %s1635_s11 = scalar_select %p1330_p3, 1, 0 }
  0x18   : > { %s1636_s12 = scalar_select %p1335_p5, 1, 0 }
  0x19   : > { %s1638_s13 = scalar_select %p1340_p7, 1, 0 }
  0x1a   : > { %1637 = sst [smem:[#allocation17_spill]] %s1636_s12  ;;  %s257_s15 = sshll.u32 %s1221_s14, 4  ;;  %s258_s15 = int_to_ptr.vmem [resolvable:$true] %s257_s15 }
  0x1b   : > { %p864_p8 = pneg %p1340_p7  ;;  %s1222_s16 = smov [#allocation7]  }
  0x1c   : > { %s267_s17 = sshll.u32 %s1222_s16, 4  ;;  %s994_s19 = scalar_lea.vmem %s258_s15, 16  ;;  %s268_s17 = int_to_ptr.vmem [resolvable:$true] %s267_s17 }
  0x1d   : > { %p1348_p9 = pnand %p864_p8, %p1614_p1  ;;  %p995_p11 = scmp.ne.s32.totalorder %s258_s15, %s994_s19 }
  0x1e   : > { %s1001_s20 = scalar_lea.vmem %s258_s15, 32  ;;  %p1002_p0 = scmp.lt.s32.totalorder %s258_s15, %s258_s15 }
  0x1f   : > { %p985_p10 = pneg %p1348_p9  ;;  %p1003_p2 = scmp.lt.s32.totalorder %s1001_s20, %s994_s19 }
  0x21   : > { %p997_p12 = pnand %p995_p11, %p985_p10  ;;  %p1004_p4 = por %p1003_p2, %p1002_p0 }
  0x23   : > { %p998_p13 = pneg %p997_p12 }
  0x25   : > { %p1005_p6 = pnand %p1004_p4, %p998_p13 }
  0x27   : > { %1008 = shalt.err (!%p1005_p6)
}
  0x28   : > { %s1640_s2 = sld [smem:[#allocation21_spill]]  ;;  %s1020_s23 = scalar_lea.vmem %s268_s17, 1024 }
  0x29   : > { %p1021_p8 = scmp.ne.s32.totalorder %s268_s17, %s1020_s23  ;;  %p1028_p12 = scmp.lt.s32.totalorder %s268_s17, %s268_s17 }
  0x2a   : > { %p1029_p5 = scmp.lt.s32.totalorder %s1020_s23, %s1020_s23 }
  0x2b   : > { %p1023_p1 = pnand %p1021_p8, %p985_p10 }
  0x2c   : > { %p1030_p3 = por %p1029_p5, %p1028_p12 }
  0x2d   : > { %p1024_p11 = pneg %p1023_p1 }
  0x2e   : > { %867 = dma.hbm_to_vmem [thread:$0]  (!%p1348_p9), %s1640_s2, 16, %s258_s15, [#allocation6]  }
  0x2f   : > { %p1031_p7 = pnand %p1030_p3, %p1024_p11 }
  0x31   : > { %1034 = shalt.err (!%p1031_p7)
}
  0x32   : > { %s1223_s14 = smov 128   ;;  %s1224_s15 = smov 8  }
  0x33   : > { %s1641_s3 = sld [smem:[#allocation22_spill]]  ;;  %p172_p1 = scmp.eq.s32.totalorder %s1320_s9, 3 }
  0x34   : > { %s37_s20 = sadd.s32 1, %s1211_s29  ;;  %s40_s21 = sadd.s32 1, %s1215_s30 }
  0x35   : > { %p38_p3 = scmp.ge.s32.totalorder %s37_s20, 2  ;;  %p56_p5 = scmp.ne.s32.totalorder %s1199_s26, %s1195_s25 }
  0x36   : > { %p57_p7 = scmp.eq.s32.totalorder %s1219_s8, 0  ;;  %s49_s18 = sadd.s32 1, %s1199_s26 }
  0x37   : > { %s1671_s20 = smov (%p38_p3, %s37_s20), 0  ;;  %s1673_s21 = smov (!%p38_p3, %s40_s21), %s1215_s30 }
  0x38   : > { %1642 = sst [smem:[#allocation18_spill]] %s1671_s20  ;;  %s45_s22 = ssub.s32 %s1211_s29, %s1671_s20 }
  0x39   : > { %870 = dma.hbm_to_vmem [thread:$0]  (!%p1348_p9), %s1641_s3, 1024, %s268_s17, [#allocation6], %s1223_s14, %s1223_s14, %s1224_s15  }
  0x3a   : > { %p42_p10 = scmp.ge.s32.totalorder %s1673_s21, 2  ;;  %p1382_p13 = por %p172_p1, %p56_p5 }
  0x3b   : > { %p1386_p9 = por %p57_p7, %p56_p5  ;;  %s284_s14 = sand.u32 1, %s1199_s26  }
  0x3c   : > { %s1643_s17 = scalar_select %p1382_p13, 1, 0 }
  0x3d   : > { %s1675_s21 = smov (%p42_p10, %s1673_s21), 0  ;;  %p887_p0 = scmp.lt.s32.totalorder %s1219_s8, 4 }
  0x3e   : > { %1644 = sst [smem:[#allocation19_spill]] %s1643_s17  ;;  %s801_s15 = sshll.u32 %s284_s14, 3 }
  0x3f   : > { %s44_s16 = ssub.s32 %s1215_s30, %s1675_s21  ;;  %s802_s10 = sshll.u32 %s1215_s30, 1 }
  0x40   : > { %s46_s19 = sor.u32 %s45_s22, %s44_s16  ;;  %s293_s2 = sadd.s32 %s1211_s29, %s802_s10 }
  0x41   : > { %p47_p2 = scmp.eq.s32.totalorder %s46_s19, 0  ;;  %s803_s3 = sshll.u32 %s293_s2, 7 }
  0x42   : > { %s288_s20 = scalar_lea.vmem [#allocation2], %s801_s15  ;;  %s1646_s0 = sld [smem:[#allocation20_spill]] }
  0x43   : > { %s297_s12 = sshll.u32 %s288_s20, 4  ;;  %p1408_p4 = pnand %p887_p0, %p1386_p9  ;;  %s298_s12 = int_to_ptr.vmem [resolvable:$true] %s297_s12 }
  0x44   : > { %s1399_s24 = scalar_select %p47_p2, %s1199_s26, %s49_s18  }
  0x45   : > { %s285_s22 = scalar_lea.sflag [#allocation3], %s284_s14  ;;  %p1037_p6 = pneg %p1408_p4 }
  0x46   : > { %s1048_s2 = scalar_lea.vmem %s298_s12, 128  ;;  %s1225_s10 = smov [#allocation2]  }
  0x47   : > { %p1049_p8 = scmp.ne.s32.totalorder %s298_s12, %s1048_s2  ;;  %s1053_s20 = sshll.u32 %s1225_s10, 4  ;;  %s1054_s20 = int_to_ptr.vmem [resolvable:$false] %s1053_s20 }
  0x48   : > { %s295_s6 = scalar_lea.hbm %s1646_s0, %s803_s3  ;;  %s1055_s5 = scalar_lea.vmem %s1054_s20, 256 }
  0x49   : > { %p1051_p11 = pnand %p1049_p8, %p1037_p6  ;;  %p1056_p1 = scmp.lt.s32.totalorder %s298_s12, %s1054_s20 }
  0x4a   : > { %p1057_p3 = scmp.lt.s32.totalorder %s1055_s5, %s1048_s2 }
  0x4b   : > { %p1052_p12 = pneg %p1051_p11 }
  0x4c   : > { %p1058_p5 = por %p1057_p3, %p1056_p1 }
  0x4e   : > { %p1059_p7 = pnand %p1058_p5, %p1052_p12 }
  0x50   : > { %1062 = shalt.err (!%p1059_p7)
}
  0x51   : > { %874 = dma.hbm_to_vmem [thread:$0]  (!%p1408_p4), %s295_s6, 128, %s298_s12, %s285_s22  }
  0x52   : > { %p1648_p10 = scmp.ne.s32.totalorder %s1638_s13, 0 }
  0x53   : > { %s1419_s3 = sand.u32 (!%p1648_p10), 1, %s1195_s25   ;;  %p1649_p9 = scmp.ne.s32.totalorder (!%p1648_p10), %s1635_s11, 0 }
  0x54   : > { %306 = sbr.rel (%p1648_p10) target bundleno = 786 (0x312), region = 40  ;;  %s805_s7 = sshll.u32 (!%p1648_p10), %s1419_s3, 3 }
  0x55   : > { %s309_s18 = scalar_lea.sflag (!%p1648_p10), [#allocation3], %s1419_s3  ;;  %s312_s23 = scalar_lea.vmem (!%p1648_p10), [#allocation2], %s805_s7 }
  0x59   : > { %1174 = dma.done.wait (%p1649_p9), %s309_s18, 128  }
  0x5a   : > { %1176 = vsyncadd (%p1649_p9), %s309_s18, 4294967168  ;;  %p1650_p0 = scmp.eq.s32.totalorder %s1320_s9, 0 }
  0x5c   : > { %1178 = dma.done.wait (%p1650_p0), [#allocation6], 1040   ;;  %p1651_p2 = pmov %p1650_p0 }
  0x5d   : > { %vm365_vm0 = vcmask 523264   ;;  %v362_v0 = vld [vmem:[%s312_s23] sm:$0xff]  ;;  %v974_v10 = vld [vmem:[#allocation7 + $0x20] ss:$8 sps:$4 sm:$0xff]   ;;  %v1226_v11 = vmov 0   ;;  %v405_v26 = vlaneseq  ;;  %s1441_s17 = sshll.u32 %s1419_s3, 4 }
  0x5e   : > { %1180 = vsyncadd (%p1651_p2), [#allocation6], 4294966256  ;;  %v366_v1 = vsel %vm365_vm0, %v362_v0, 0.0  ;;  %v969_v7 = vld [vmem:[#allocation7 + $0x34] ss:$8 sps:$4 sm:$0xff]   ;;  %490 = vmatprep.mubr.bf16.mxu0 %v1226_v11  ;;  %vm501_vm1 = vcmask 125952  }
  0x5f   : > { %367 = vadd.xlane.f32.xlu0 %v366_v1  ;;  %v971_v8 = vld [vmem:[#allocation7 + $0x30] ss:$8 sps:$4 sm:$0xff]   ;;  %v972_v9 = vld [vmem:[#allocation7 + $0x24] ss:$8 sps:$4 sm:$0xff]   ;;  %466 = vmatprep.subr.bf16.mxu0 %v969_v7  ;;  %v975_v12 = vld [vmem:[#allocation7 + $0x14] ss:$8 sps:$4 sm:$0xff]  }
  0x60   : > { %467 = vmatpush1.bf16.msra.mxu0 %v971_v8  ;;  %v977_v13 = vld [vmem:[#allocation7 + $0x10] ss:$8 sps:$4 sm:$0xff]   ;;  %v978_v14 = vld [vmem:[#allocation7 + $0x4] ss:$8 sps:$4 sm:$0xff]   ;;  %v980_v15 = vld [vmem:[#allocation7] ss:$8 sps:$4 sm:$0xff]  }
  0x61   : > { %468 = vmatprep.subr.bf16.mxu0 %v972_v9  ;;  %v811_v20 = vld [vmem:[%s1607_s1] ss:$0 sm:$0xff]  ;;  %v812_v22 = vld [vmem:[#allocation5] ss:$0 sm:$0xff]  ;;  %v406_v27 = vshrl.u32 %v405_v26, 7  ;;  %s1227_s14 = smov 32  }
  0x62   : > { %v403_v29 = vld [vmem:[%s1610_s4] sm:$0x3]  ;;  %s1626_s15 = smov 64   ;;  %s1445_s16 = scalar_lea.vmem [#allocation11], %s1441_s17 }
  0x63   : > { %v407_v28 = vsub.s32 0, %v406_v27  ;;  %v411_v30 = vsub.s32 1, %v406_v27  ;;  %s1450_s19 = scalar_lea.vmem [#allocation8], %s1441_s17  ;;  %s1229_s22 = smov 80  }
  0x64   : > { %469 = vmatpush1.bf16.msra.mxu0 %v974_v10  ;;  %s1230_s2 = smov 48   ;;  %s1231_s10 = smov 16  }
  0x65   : > { %470 = vmatprep.subr.bf16.mxu0 %v975_v12  ;;  %v408_v31 = vrot.slane %v403_v29, %v407_v28  ;;  %v412_v32 = vrot.slane %v403_v29, %v411_v30  ;;  %s1232_s20 = smov 112   ;;  %s1233_s5 = smov 96  }
  0x66   : > { %s837_s7 = sshll.u32 %s1207_s28, 3  ;;  %s353_s18 = scalar_lea.vmem [#allocation9], %s1441_s17 }
  0x67   : > { %s586_s6 = sadd.s32 %s1203_s27, %s837_s7  ;;  %s606_s11 = sshll.u32 %s353_s18, 4  ;;  %s1462_s11 = int_to_ptr.vmem [resolvable:$true] %s606_s11 }
  0x68   : > { %471 = vmatpush1.bf16.msra.mxu0 %v977_v13  ;;  %s569_s12 = sand.u32 1, %s1320_s9   ;;  %s1460_s13 = sshll.u32 %s586_s6, 6 }
  0x69   : > { %472 = vmatprep.subr.bf16.mxu0 %v978_v14  ;;  %s1474_s9 = scalar_lea.sflag [#allocation10], %s569_s12 }
  0x6c   : > { %473 = vmatpush1.bf16.msra.mxu0 %v980_v15 }
  0xe8   : > { %v368_v2 = vpop.xlane.xlu0 %367 }
  0xe9   : > { %v370_v3 = vmul.f32 0.015625, %v368_v2 }
  0xeb   : > { %v371_v4 = vsub.f32 %v362_v0, %v370_v3 }
  0xed   : > { %v372_v5 = vmul.f32 %v371_v4, %v371_v4 }
  0xef   : > { %v373_v6 = vsel %vm365_vm0, %v372_v5, 0.0 }
  0xf0   : > { %374 = vadd.xlane.f32.xlu0 %v373_v6 }
 0x179   : > { %v375_v16 = vpop.xlane.xlu0 %374 }
 0x17a   : > { %v376_v17 = vmul.f32 0.015625, %v375_v16 }
 0x17c   : > { %v377_v18 = vadd.f32 1e-05, %v376_v17 }
 0x17e   : > { %981 = vrsqrt.f32 %v377_v18 }
 0x18b   : > { %v982_v19 = vpop.eup %981 }
 0x18c   : > { %v379_v21 = vmul.f32 %v982_v19, %v371_v4 }
 0x18e   : > { %v386_v23 = vmul.f32 %v811_v20, %v379_v21 }
 0x190   : > { %v393_v24 = vadd.f32 %v812_v22, %v386_v23 }
 0x192   : > { %v394_v25 = vpack.c.bf16 %v393_v24, %v393_v24 }
 0x194   : > { %821 = vmatmul.mubr.msk.bf16.vlgmr.msra.gmra.mxu0 %vm365_vm0, %v394_v25 }
 0x254   : > { %v492_v33 = vpop.f32.mrf.mxu0 }
 0x255   : > { %v493_v34 = vadd.f32 %v492_v33, %v408_v31 }
 0x256   : > { %v494_v35 = vpop.f32.mrf.mxu0 }
 0x257   : > { %v499_v36 = vmul.f32 0.25, %v493_v34  ;;  %v845_v37 = vpack.c.bf16 %v493_v34, %v493_v34  ;;  %v495_v38 = vadd.f32 %v494_v35, %v412_v32 }
 0x258   : > { %v496_v39 = vpop.f32.mrf.mxu0 }
 0x259   : > { %v500_v40 = vpack.c.bf16 %v499_v36, %v499_v36  ;;  %v511_v41 = vpack.c.bf16 %v495_v38, %v495_v38  ;;  %539 = vrot.lane.b32.xlu0 %v845_v37, %s1227_s14  ;;  %507 = vrot.lane.b32.xlu1 %v845_v37, %s1626_s15  ;;  %s1653_s14 = sld [smem:[#allocation24_spill]] }
 0x25a   : > { %v497_v42 = vpop.f32.mrf.mxu0 }
 0x25b   : > { %512 = vst.msk [vmem:[%s1445_s16] sm:$0xf] %vm501_vm1, %v511_v41  ;;  %502 = vst.msk [vmem:[%s1450_s19] sm:$0xf] %vm501_vm1, %v500_v40 }
 0x25d   : > { %559 = vrot.lane.b32.xlu0 %v511_v41, %s1229_s22  ;;  %521 = vrot.lane.b32.xlu1 %v845_v37, %s1230_s2  ;;  %s1234_s2 = smov [#allocation9]  }
 0x25f   : > { %s1471_s27 = scalar_lea.hbm %s1653_s14, %s1460_s13 }
 0x261   : > { %554 = vrot.lane.b32.xlu1 %v845_v37, %s1231_s10  ;;  %s1067_s10 = sshll.u32 %s1234_s2, 4  ;;  %s1068_s10 = int_to_ptr.vmem [resolvable:$false] %s1067_s10 }
 0x262   : > { %p1070_p11 = scmp.lt.s32.totalorder %s1462_s11, %s1068_s10 }
 0x265   : > { %516 = vrot.lane.b32.xlu1 %v500_v40, %s1232_s20 }
 0x269   : > { %529 = vrot.lane.b32.xlu1 %v511_v41, %s1232_s20  ;;  %s1069_s20 = scalar_lea.vmem %s1068_s10, 512 }
 0x26d   : > { %534 = vrot.lane.b32.xlu1 %v500_v40, %s1233_s5 }
 0x271   : > { %544 = vrot.lane.b32.xlu1 %v511_v41, %s1233_s5 }
 0x275   : > { %549 = vrot.lane.b32.xlu1 %v500_v40, %s1229_s22  ;;  %s1063_s22 = scalar_lea.vmem %s1462_s11, 256 }
 0x276   : > { %p1064_p4 = scmp.ne.s32.totalorder %s1462_s11, %s1063_s22  ;;  %p1071_p12 = scmp.lt.s32.totalorder %s1069_s20, %s1063_s22 }
 0x278   : > { %p1065_p6 = pnand %p1064_p4, %p1382_p13  ;;  %p1072_p1 = por %p1071_p12, %p1070_p11 }
 0x27a   : > { %p1066_p8 = pneg %p1065_p6 }
 0x27c   : > { %p1073_p3 = pnand %p1072_p1, %p1066_p8 }
 0x2cb   : > { %v540_v43 = vpop.permute.xlu0 %539  ;;  %v508_v44 = vpop.permute.xlu1 %507 }
 0x2cc   : > { %829 = vst.msk [vmem:[%s353_s18 + $0x8] sm:$0xf] %vm501_vm1, %v540_v43  ;;  %510 = vst.msk [vmem:[%s353_s18] sm:$0xf] %vm501_vm1, %v508_v44 }
 0x2cf   : > { %v560_v45 = vpop.permute.xlu0 %559  ;;  %v522_v46 = vpop.permute.xlu1 %521 }
 0x2d0   : > { %833 = vst.msk [vmem:[%s1445_s16 + $0xc] sm:$0xf] %vm501_vm1, %v560_v45  ;;  %825 = vst.msk [vmem:[%s353_s18 + $0x4] sm:$0xf] %vm501_vm1, %v522_v46 }
 0x2d3   : > { %v555_v47 = vpop.permute.xlu1 %554 }
 0x2d4   : > { %832 = vst.msk [vmem:[%s353_s18 + $0xc] sm:$0xf] %vm501_vm1, %v555_v47 }
 0x2d5   : > { %1076 = shalt.err (!%p1073_p3)
}
 0x2d6   : > { %s1077_s5 = scalar_lea.hbm %s1471_s27, 256  ;;  %s1081_s6 = scalar_lea.hbm %s1653_s14, 1024 }
 0x2d7   : > { %p1078_p5 = scmp.ne.s32.totalorder %s1471_s27, %s1077_s5  ;;  %p1082_p9 = scmp.lt.s32.totalorder %s1471_s27, %s1653_s14 }
 0x2d8   : > { %p1083_p0 = scmp.lt.s32.totalorder %s1081_s6, %s1077_s5 }
 0x2d9   : > { %p1079_p7 = pnand %p1078_p5, %p1382_p13 }
 0x2da   : > { %p1084_p2 = por %p1083_p0, %p1082_p9 }
 0x2db   : > { %p1080_p10 = pneg %p1079_p7 }
 0x2dd   : > { %p1085_p4 = pnand %p1084_p2, %p1080_p10 }
 0x2df   : > { %1088 = shalt.err (!%p1085_p4)
}
 0x2e0   : > { %s1235_s17 = smov 128   ;;  %s1236_s22 = smov 4   ;;  %v517_v48 = vpop.permute.xlu1 %516 }
 0x2e1   : > { %859 = dma.vmem_to_hbm [thread:$0]  (%p1382_p13), %s1462_s11, 256, %s1471_s27, %s1474_s9, %s1626_s15, %s1235_s17, %s1236_s22  }
 0x2e2   : > { %824 = vst.msk [vmem:[%s1450_s19 + $0x4] sm:$0xf] %vm501_vm1, %v517_v48  ;;  %s623_s2 = sshll.u32 %s1445_s16, 4  ;;  %s589_s10 = sshll.u32 %s1450_s19, 4  ;;  %s1508_s2 = int_to_ptr.vmem [resolvable:$true] %s623_s2  ;;  %s1516_s10 = int_to_ptr.vmem [resolvable:$true] %s589_s10 }
 0x2e3   : > { %s1654_s7 = sld [smem:[#allocation25_spill]]  ;;  %s1089_s27 = scalar_lea.vmem %s1508_s2, 256 }
 0x2e4   : > { %v530_v49 = vpop.permute.xlu1 %529  ;;  %p1090_p6 = scmp.ne.s32.totalorder %s1508_s2, %s1089_s27  ;;  %s1237_s18 = smov [#allocation11]  }
 0x2e5   : > { %827 = vst.msk [vmem:[%s1445_s16 + $0x4] sm:$0xf] %vm501_vm1, %v530_v49  ;;  %s1093_s6 = sshll.u32 %s1237_s18, 4  ;;  %s1094_s6 = int_to_ptr.vmem [resolvable:$false] %s1093_s6 }
 0x2e6   : > { %p1091_p8 = pnand %p1090_p6, %p1382_p13  ;;  %s1095_s12 = scalar_lea.vmem %s1094_s6, 512 }
 0x2e7   : > { %p1096_p12 = scmp.lt.s32.totalorder %s1508_s2, %s1094_s6  ;;  %p1097_p1 = scmp.lt.s32.totalorder %s1095_s12, %s1089_s27 }
 0x2e8   : > { %v535_v50 = vpop.permute.xlu1 %534  ;;  %p1092_p11 = pneg %p1091_p8 }
 0x2e9   : > { %828 = vst.msk [vmem:[%s1450_s19 + $0x8] sm:$0xf] %vm501_vm1, %v535_v50  ;;  %s1514_s11 = scalar_lea.hbm %s1654_s7, %s1460_s13  ;;  %p1098_p3 = por %p1097_p1, %p1096_p12 }
 0x2eb   : > { %p1099_p5 = pnand %p1098_p3, %p1092_p11 }
 0x2ec   : > { %v545_v51 = vpop.permute.xlu1 %544 }
 0x2ed   : > { %830 = vst.msk [vmem:[%s1445_s16 + $0x8] sm:$0xf] %vm501_vm1, %v545_v51 }
 0x2ee   : > { %1102 = shalt.err (!%p1099_p5)
}
 0x2ef   : > { %s1103_s28 = scalar_lea.hbm %s1514_s11, 256  ;;  %s1107_s5 = scalar_lea.hbm %s1654_s7, 1024 }
 0x2f0   : > { %p1104_p7 = scmp.ne.s32.totalorder %s1514_s11, %s1103_s28  ;;  %p1108_p0 = scmp.lt.s32.totalorder %s1514_s11, %s1654_s7 }
 0x2f1   : > { %p1109_p2 = scmp.lt.s32.totalorder %s1107_s5, %s1103_s28 }
 0x2f2   : > { %p1105_p10 = pnand %p1104_p7, %p1382_p13 }
 0x2f3   : > { %p1110_p4 = por %p1109_p2, %p1108_p0 }
 0x2f4   : > { %p1106_p9 = pneg %p1105_p10 }
 0x2f6   : > { %p1111_p6 = pnand %p1110_p4, %p1106_p9 }
 0x2f8   : > { %1114 = shalt.err (!%p1111_p6)
}
 0x2f9   : > { %s1655_s27 = smov 64   ;;  %s1656_s12 = sld [smem:[#allocation23_spill]]  ;;  %v550_v52 = vpop.permute.xlu1 %549 }
 0x2fa   : > { %860 = dma.vmem_to_hbm [thread:$0]  (%p1382_p13), %s1508_s2, 256, %s1514_s11, %s1474_s9, %s1655_s27, %s1235_s17, %s1236_s22  }
 0x2fb   : > { %831 = vst.msk [vmem:[%s1450_s19 + $0xc] sm:$0xf] %vm501_vm1, %v550_v52  ;;  %s565_s16 = scalar_lea.sflag [#allocation4], %s1419_s3  ;;  %s1115_s20 = scalar_lea.vmem %s1516_s10, 256 }
 0x2fc   : > { %p1116_p8 = scmp.ne.s32.totalorder %s1516_s10, %s1115_s20  ;;  %s1238_s5 = smov [#allocation8]  }
 0x2fd   : > { %s1119_s18 = sshll.u32 %s1238_s5, 4  ;;  %s1120_s18 = int_to_ptr.vmem [resolvable:$false] %s1119_s18 }
 0x2fe   : > { %p1117_p11 = pnand %p1116_p8, %p1382_p13  ;;  %s1121_s0 = scalar_lea.vmem %s1120_s18, 512 }
 0x2ff   : > { %s1548_s28 = scalar_lea.hbm %s1656_s12, %s1460_s13  ;;  %p1122_p1 = scmp.lt.s32.totalorder %s1516_s10, %s1120_s18 }
 0x300   : > { %p1118_p12 = pneg %p1117_p11  ;;  %p1123_p3 = scmp.lt.s32.totalorder %s1121_s0, %s1115_s20 }
 0x302   : > { %p1124_p5 = por %p1123_p3, %p1122_p1 }
 0x304   : > { %p1125_p7 = pnand %p1124_p5, %p1118_p12 }
 0x306   : > { %1128 = shalt.err (!%p1125_p7)
}
 0x307   : > { %s1129_s19 = scalar_lea.hbm %s1548_s28, 256  ;;  %s1133_s9 = scalar_lea.hbm %s1656_s12, 1024 }
 0x308   : > { %p1130_p10 = scmp.ne.s32.totalorder %s1548_s28, %s1129_s19  ;;  %p1134_p2 = scmp.lt.s32.totalorder %s1548_s28, %s1656_s12 }
 0x309   : > { %p1135_p4 = scmp.lt.s32.totalorder %s1133_s9, %s1129_s19 }
 0x30a   : > { %p1131_p9 = pnand %p1130_p10, %p1382_p13 }
 0x30b   : > { %p1136_p6 = por %p1135_p4, %p1134_p2 }
 0x30c   : > { %p1132_p0 = pneg %p1131_p9 }
 0x30e   : > { %p1137_p8 = pnand %p1136_p6, %p1132_p0 }
 0x310   : > { %1140 = shalt.err (!%p1137_p8)
}
 0x311   : > { %858 = dma.vmem_to_hbm [thread:$0]  (%p1382_p13), %s1516_s10, 256, %s1548_s28, %s565_s16, %s1655_s27, %s1235_s17, %s1236_s22  }
 0x312 PF: > { %s1657_s0 = sld [smem:[#allocation16_spill]]  ;;  %p890_p11 = scmp.ge.s32.totalorder %s1219_s8, 2 }
 0x313   : > { %s1658_s15 = sld [smem:[#allocation17_spill]] }
 0x318   : > { %s638_s6 = sand.u32 1, %s1657_s0  }
 0x319   : > { %p1659_p12 = scmp.ne.s32.totalorder %s1658_s15, 0  ;;  %s639_s20 = scalar_lea.sflag [#allocation4], %s638_s6 }
 0x31b   : > { %p876_p1 = pnand %p890_p11, %p1659_p12 }
 0x31d   : > { %p877_p3 = pneg %p876_p1 }
 0x31f   : > { %1182 = dma.done.wait (%p877_p3), %s639_s20, 256  }
 0x320   : > { %1184 = vsyncadd (%p877_p3), %s639_s20, 4294967040  ;;  %s1660_s23 = sadd.s32 4294967294, %s1219_s8  }
 0x321   : > { %s647_s5 = sand.u32 1, %s1660_s23  }
 0x322   : > { %s648_s18 = scalar_lea.sflag [#allocation10], %s647_s5 }
 0x323   : > { %1186 = dma.done.wait (%p877_p3), %s648_s18, 512  }
 0x324   : > { %1188 = vsyncadd (%p877_p3), %s648_s18, 4294966784  ;;  %s28_s8 = sadd.s32 1, %s1219_s8   ;;  %s1661_s17 = smov %s1399_s24 }
 0x325   : > { %p25_p13 = scmp.ge.s32.totalorder %s28_s8, 6   ;;  %s1662_s22 = sld [smem:[#allocation18_spill]] }
 0x326   : > { %s1663_s24 = smov %s1195_s25  ;;  %s1664_s25 = smov %s1199_s26 }
 0x327   : > { %s1665_s26 = smov %s1661_s17  ;;  %s1666_s27 = smov %s1211_s29 }
 0x328   : > { %s1667_s28 = smov %s1215_s30  ;;  %s1669_s30 = smov %s1675_s21 }
 0x329   :  { %27 = sbr.rel (!%p25_p13) target bundleno = 17 (0x11), region = 134 }
 0x32b   : > { %s1668_s29 = smov %s1662_s22 }
 0x32e   :  { %662 = vsyncpa [#allocation3], 1 }
 0x32f   :  { %664 = vsyncpa [#allocation3 + $0x1], 1 }
 0x330   :  { %665 = vsyncpa [#allocation6], 1 }
 0x331   :  { %666 = vsyncpa [#allocation4], 1 }
 0x332   :  { %668 = vsyncpa [#allocation4 + $0x1], 1 }
 0x333   :  { %669 = vsyncpa [#allocation10], 1 }
 0x334   :  { %671 = vsyncpa [#allocation10 + $0x1], 1 }

</bundles_post_ra>
